<compile_context>
chip_gen: v6e
topology: v6e:2x2x1
jax: 0.10.0
libtpu: 0.0.40
codegen_flags: <defaults>
</compile_context>

<pallas_src>
import math
import functools

import numpy as np
import jax
import jax.numpy as jnp
from jax import lax
from jax.experimental import pallas as pl
from jax.experimental.pallas import tpu as pltpu


# ---------------------------------------------------------------------------
# Host-side coefficient construction (replicates the module's weight math,
# including the original 2*sigma-in-the-denominator quirk).
# ---------------------------------------------------------------------------
def _normalize_params(kernel_size, sigma, dim=2):
    if isinstance(kernel_size, (int, float, np.integer)):
        kernel_size = (int(kernel_size),) * dim
    else:
        kernel_size = tuple(int(k) for k in kernel_size)
    if isinstance(sigma, (int, float, np.floating)):
        sigma = (float(sigma),) * dim
    else:
        sigma = tuple(float(s) for s in sigma)
    return kernel_size, sigma


def make_gaussian_coeffs(kernel_size, sigma, dim=2):
    """2D kernel, exactly as GaussianSmoothing.__init__ builds it (for reference)."""
    kernel_size, sigma = _normalize_params(kernel_size, sigma, dim)
    meshgrids = np.meshgrid(
        *[np.arange(size, dtype=np.float32) for size in kernel_size], indexing="ij")
    kernel = np.ones((), dtype=np.float32)
    for size, std, mgrid in zip(kernel_size, sigma, meshgrids):
        mean = (size - 1) / 2
        kernel = kernel * (
            1.0 / (std * math.sqrt(2 * math.pi))
            * np.exp(-(((mgrid - mean) / (2 * std)) ** 2)))
    return (kernel / kernel.sum()).astype(np.float32)


def make_gaussian_coeffs_1d(kernel_size, sigma, dim=2):
    """Per-dim normalized 1D taps.  The module's normalized 2D kernel is exactly
    the outer product of these (rank-1 separable), so two 1D passes reproduce it."""
    kernel_size, sigma = _normalize_params(kernel_size, sigma, dim)
    taps = []
    for size, std in zip(kernel_size, sigma):
        grid = np.arange(size, dtype=np.float64)
        mean = (size - 1) / 2
        g = (1.0 / (std * math.sqrt(2 * math.pi))
             * np.exp(-(((grid - mean) / (2 * std)) ** 2)))
        taps.append(g / g.sum())
    return taps  # [vertical (H) taps, horizontal (W) taps]


# ---------------------------------------------------------------------------
# Pallas kernel: separable depthwise blur on an (N, H, W) block.
#   x_ref: (TILE_N, H, W)     input block (W = lanes, H = sublanes)
#   o_ref: (TILE_N, OH, OW)   output block
#   t_ref: (TILE_N, H, OW)    f32 scratch holding the horizontal-pass result
# ---------------------------------------------------------------------------
def _smoothing_kernel(x_ref, o_ref, t_ref, *, kh, kv, OH, OW):
    Kh, Kv = len(kh), len(kv)

    # Horizontal (lane-axis) pass: t[n, h, w] = sum_j kh[j] * x[n, h, w + j].
    # Per-slice cast keeps bf16 inputs from materialising a full f32 copy.
    acc = kh[0] * x_ref[:, :, pl.ds(0, OW)].astype(jnp.float32)
    for j in range(1, Kh):
        acc = acc + kh[j] * x_ref[:, :, pl.ds(j, OW)].astype(jnp.float32)
    t_ref[...] = acc

    # Vertical (sublane-axis) pass: o[n, h, w] = sum_i kv[i] * t[n, h + i, w].
    out = kv[0] * t_ref[:, pl.ds(0, OH), :]
    for i in range(1, Kv):
        out = out + kv[i] * t_ref[:, pl.ds(i, OH), :]
    o_ref[...] = out.astype(o_ref.dtype)


# ---------------------------------------------------------------------------
# Tiling helpers.
# ---------------------------------------------------------------------------
def _padded_bytes(shape, itemsize):
    """VMEM footprint of a block: last two dims tile-padded to (8, 128)."""
    *lead, s, l = shape
    s = -(-s // 8) * 8
    l = -(-l // 128) * 128
    return int(np.prod(lead, dtype=np.int64)) * s * l * itemsize if lead else s * l * itemsize


def _block_vmem_bytes(tile_n, H, W, OH, OW, itemsize):
    # 2x double-buffered input + 2x double-buffered output + f32 scratch.
    return (2 * _padded_bytes((tile_n, H, W), itemsize)
            + 2 * _padded_bytes((tile_n, OH, OW), itemsize)
            + _padded_bytes((tile_n, H, OW), 4))


def _choose_tile_n(N, H, W, OH, OW, itemsize, budget_bytes=24 * 2**20):
    divisors = [d for d in range(N, 0, -1) if N % d == 0]
    # Prefer >=4 blocks (pipelining + both v7x TensorCores), accept >=2, then any.
    for target_blocks in (4 if N >= 4 else (2 if N >= 2 else 1),
                          2 if N >= 2 else 1,
                          1):
        for d in divisors:
            if N // d < target_blocks:
                continue
            if _block_vmem_bytes(d, H, W, OH, OW, itemsize) <= budget_bytes:
                return d
    return 1


# ---------------------------------------------------------------------------
# Wrapper.
# ---------------------------------------------------------------------------
@functools.partial(jax.jit, static_argnums=(1, 2))
def _gaussian_smoothing_impl(x, kernel_size, sigma):
    B, C, H, W = x.shape
    kv_np, kh_np = make_gaussian_coeffs_1d(kernel_size, sigma, dim=2)
    Kv, Kh = len(kv_np), len(kh_np)
    OH, OW = H - Kv + 1, W - Kh + 1

    N = B * C
    xr = x.reshape(N, H, W)                       # free reshape, no transpose

    itemsize = x.dtype.itemsize
    TILE_N = _choose_tile_n(N, H, W, OH, OW, itemsize)
    n_blk = N // TILE_N

    vmem_est = _block_vmem_bytes(TILE_N, H, W, OH, OW, itemsize)
    vmem_limit = int(min(64 * 2**20, max(vmem_est + (8 << 20), 32 * 2**20)))

    kernel = functools.partial(
        _smoothing_kernel,
        kh=tuple(float(c) for c in kh_np),
        kv=tuple(float(c) for c in kv_np),
        OH=OH, OW=OW)

    y = pl.pallas_call(
        kernel,
        out_shape=jax.ShapeDtypeStruct((N, OH, OW), x.dtype),
        grid_spec=pltpu.PrefetchScalarGridSpec(
            num_scalar_prefetch=0,
            grid=(n_blk,),
            in_specs=[pl.BlockSpec((TILE_N, H, W), lambda n: (n, 0, 0))],
            out_specs=pl.BlockSpec((TILE_N, OH, OW), lambda n: (n, 0, 0)),
            scratch_shapes=[pltpu.VMEM((TILE_N, H, OW), jnp.float32)],
        ),
        compiler_params=pltpu.CompilerParams(
            dimension_semantics=("parallel",),
            vmem_limit_bytes=vmem_limit,
        ),
    )(xr)

    return y.reshape(B, C, OH, OW)                # free reshape, no transpose


def gaussian_smoothing(x, kernel_size, sigma):
    """x: (B, C, H, W) -> (B, C, H-Kv+1, W-Kh+1); depthwise gaussian, valid padding."""
    ks, sg = _normalize_params(kernel_size, sigma, dim=2)
    return _gaussian_smoothing_impl(x, ks, sg)


def reference_gaussian_smoothing(x, weight):
    """Pure-JAX reference: depthwise conv2d, groups=C, no padding (valid)."""
    C = x.shape[1]
    return lax.conv_general_dilated(
        x, weight,
        window_strides=(1, 1),
        padding="VALID",
        feature_group_count=C,
        dimension_numbers=("NCHW", "OIHW", "NCHW"),
    )


if __name__ == "__main__":
    B, C, H, W = 2, 4, 16, 16
    kernel_size, sigma = 3, 2.0

    key = jax.random.PRNGKey(0)
    x = jax.random.normal(key, (B, C, H, W), dtype=jnp.float32)

    out = jax.block_until_ready(gaussian_smoothing(x, kernel_size, sigma))

    coeffs = make_gaussian_coeffs(kernel_size, sigma, dim=2)
    weight = jnp.broadcast_to(
        jnp.asarray(coeffs, jnp.float32)[None, None],
        (C, 1, kernel_size, kernel_size))
    ref = jax.block_until_ready(reference_gaussian_smoothing(x, weight))

    assert out.shape == (B, C, H - kernel_size + 1, W - kernel_size + 1)
    assert jnp.allclose(out, ref, atol=1e-5, rtol=1e-5), "mismatch vs reference"

    print("KERNEL_OK")
</pallas_src>

<mosaic_0001>
module attributes {stable_mosaic.version = 11 : i64} {
  func.func @_smoothing_kernel(%arg0: i32, %arg1: memref<2x16x16xf32, #tpu.memory_space<vmem>>, %arg2: memref<2x14x14xf32, #tpu.memory_space<vmem>>, %arg3: memref<2x16x14xf32, #tpu.memory_space<vmem>>) attributes {dimension_semantics = [#tpu.dimension_semantics<parallel>], iteration_bounds = array<i64: 4>, scalar_prefetch = 0 : i64, scratch_operands = 1 : i64, tpu.core_type = #tpu.core_type<tc>, window_params = [{transform_indices = @transform_0, window_bounds = array<i64: 2, 16, 16>}, {transform_indices = @transform_1, window_bounds = array<i64: 2, 14, 14>}]} {
    %c0 = arith.constant 0 : index
    %c0_0 = arith.constant 0 : index
    %c0_1 = arith.constant 0 : index
    %0 = vector.load %arg1[%c0, %c0_0, %c0_1] : memref<2x16x16xf32, #tpu.memory_space<vmem>>, vector<2x16x14xf32>
    %cst = arith.constant 0.326318085 : f32
    %1 = vector.broadcast %cst : f32 to vector<2x16x14xf32>
    %2 = arith.mulf %1, %0 : vector<2x16x14xf32>
    %c0_2 = arith.constant 0 : index
    %c0_3 = arith.constant 0 : index
    %c1 = arith.constant 1 : index
    %3 = vector.load %arg1[%c0_2, %c0_3, %c1] : memref<2x16x16xf32, #tpu.memory_space<vmem>>, vector<2x16x14xf32>
    %cst_4 = arith.constant 0.3473638 : f32
    %4 = vector.broadcast %cst_4 : f32 to vector<2x16x14xf32>
    %5 = arith.mulf %4, %3 : vector<2x16x14xf32>
    %6 = arith.addf %2, %5 : vector<2x16x14xf32>
    %c0_5 = arith.constant 0 : index
    %c0_6 = arith.constant 0 : index
    %c2 = arith.constant 2 : index
    %7 = vector.load %arg1[%c0_5, %c0_6, %c2] : memref<2x16x16xf32, #tpu.memory_space<vmem>>, vector<2x16x14xf32>
    %cst_7 = arith.constant 0.326318085 : f32
    %8 = vector.broadcast %cst_7 : f32 to vector<2x16x14xf32>
    %9 = arith.mulf %8, %7 : vector<2x16x14xf32>
    %10 = arith.addf %6, %9 : vector<2x16x14xf32>
    %c0_8 = arith.constant 0 : index
    %c0_9 = arith.constant 0 : index
    %c0_10 = arith.constant 0 : index
    %11 = vector.load %arg3[%c0_8, %c0_9, %c0_10] : memref<2x16x14xf32, #tpu.memory_space<vmem>>, vector<2x16x14xf32>
    tpu.vector_store %arg3[%c0_8, %c0_9, %c0_10], %10 {strides = array<i32>} : memref<2x16x14xf32, #tpu.memory_space<vmem>>, vector<2x16x14xf32>,
    %c0_11 = arith.constant 0 : index
    %c0_12 = arith.constant 0 : index
    %c0_13 = arith.constant 0 : index
    %12 = vector.load %arg3[%c0_11, %c0_12, %c0_13] : memref<2x16x14xf32, #tpu.memory_space<vmem>>, vector<2x14x14xf32>
    %cst_14 = arith.constant 0.326318085 : f32
    %13 = vector.broadcast %cst_14 : f32 to vector<2x14x14xf32>
    %14 = arith.mulf %13, %12 : vector<2x14x14xf32>
    %c0_15 = arith.constant 0 : index
    %c1_16 = arith.constant 1 : index
    %c0_17 = arith.constant 0 : index
    %15 = vector.load %arg3[%c0_15, %c1_16, %c0_17] : memref<2x16x14xf32, #tpu.memory_space<vmem>>, vector<2x14x14xf32>
    %cst_18 = arith.constant 0.3473638 : f32
    %16 = vector.broadcast %cst_18 : f32 to vector<2x14x14xf32>
    %17 = arith.mulf %16, %15 : vector<2x14x14xf32>
    %18 = arith.addf %14, %17 : vector<2x14x14xf32>
    %c0_19 = arith.constant 0 : index
    %c2_20 = arith.constant 2 : index
    %c0_21 = arith.constant 0 : index
    %19 = vector.load %arg3[%c0_19, %c2_20, %c0_21] : memref<2x16x14xf32, #tpu.memory_space<vmem>>, vector<2x14x14xf32>
    %cst_22 = arith.constant 0.326318085 : f32
    %20 = vector.broadcast %cst_22 : f32 to vector<2x14x14xf32>
    %21 = arith.mulf %20, %19 : vector<2x14x14xf32>
    %22 = arith.addf %18, %21 : vector<2x14x14xf32>
    %c0_23 = arith.constant 0 : index
    %c0_24 = arith.constant 0 : index
    %c0_25 = arith.constant 0 : index
    %23 = vector.load %arg2[%c0_23, %c0_24, %c0_25] : memref<2x14x14xf32, #tpu.memory_space<vmem>>, vector<2x14x14xf32>
    tpu.vector_store %arg2[%c0_23, %c0_24, %c0_25], %22 {strides = array<i32>} : memref<2x14x14xf32, #tpu.memory_space<vmem>>, vector<2x14x14xf32>,
    return
  }
  func.func @transform_0(%arg0: i32) -> (i32, i32, i32) {
    %c0_i32 = arith.constant 0 : i32
    %c0_i32_0 = arith.constant 0 : i32
    %c0_i32_1 = arith.constant 0 : i32
    return %arg0, %c0_i32, %c0_i32_0 : i32, i32, i32
  }
  func.func @transform_1(%arg0: i32) -> (i32, i32, i32) {
    %c0_i32 = arith.constant 0 : i32
    %c0_i32_0 = arith.constant 0 : i32
    %c0_i32_1 = arith.constant 0 : i32
    return %arg0, %c0_i32, %c0_i32_0 : i32, i32, i32
  }
}

</mosaic_0001>

<bundles_post_ra>
// kernel: _gaussian_smoothing_impl.1
= control target key start
LH: loop header
LB: loop body
LE: loop exit
PB: predicated region body
PF: predicated region fallthrough
CT: control target
= control target key end

     0   :  { %6 = vsyncpa [#allocation4], 0  ;;  %s553_s0 = inlined_call_operand.hbm [shape: f32[8,16,16], index: 0, kind: input, shape index: {}]   ;;  %s554_s1 = inlined_call_operand.vmem [shape: f32[8,14,14], index: 1, kind: output, shape index: {}]  }
   0x1   :  { %8 = vsyncpa [#allocation4 + $0x1], 0  ;;  %s445_s6 = smov 0   ;;  %s447_s7 = smov 0  }
   0x2   :  { %s449_s8 = smov 0   ;;  %s451_s9 = smov 0  }
   0x3 LB: > { %s305_s10 = sadd.s32 4294967295, %s428_s9   ;;  %s465_s11 = sadd.s32 1, %s428_s9   ;;  %s428_s9 = sphi %s451_s9, %s563_s9   ;;  %s424_s8 = sphi %s449_s8, %s562_s8   ;;  %s420_s7 = sphi %s447_s7, %s561_s7   ;;  %s416_s6 = sphi %s445_s6, %s560_s6  }
   0x4   : > { %s18_s12 = ssub.s32 %s428_s9, %s465_s11  ;;  %s21_s13 = sadd.s32 1, %s424_s8 }
   0x5   : > { %p19_p0 = scmp.eq.s32.totalorder %s18_s12, 0  ;;  %p28_p1 = scmp.ne.s32.totalorder %s424_s8, %s420_s7 }
   0x6   : > { %p29_p2 = scmp.eq.s32.totalorder %s428_s9, 0  ;;  %p34_p3 = scmp.ne.s32.totalorder %s420_s7, %s416_s6 }
   0x7   : > { %s475_s14 = scalar_select %p19_p0, %s424_s8, %s21_s13  }
   0x8   : > { %p30_p4 = por %p29_p2, %p28_p1  ;;  %p35_p5 = scmp.eq.s32.totalorder %s305_s10, 0 }
   0x9   : > { %p329_p6 = scmp.lt.s32.totalorder %s428_s9, 4  ;;  %s84_s16 = sand.u32 1, %s424_s8  }
   0xa   : > { %p480_p7 = por %p35_p5, %p34_p3  ;;  %s309_s17 = sshll.u32 %s84_s16, 5 }
   0xb   : > { %s321_s18 = sshll.u32 %s428_s9, 9  ;;  %s88_s22 = scalar_lea.vmem [#allocation3], %s309_s17 }
   0xc   : > { %s556_s15 = scalar_select %p480_p7, 1, 0 }
   0xd   : > { %s489_s21 = scalar_lea.hbm %s553_s0, %s321_s18  ;;  %s96_s23 = sshll.u32 %s88_s22, 4  ;;  %s491_s23 = int_to_ptr.vmem [resolvable:$true] %s96_s23 }
   0xe   : > { %p493_p8 = pnand %p329_p6, %p30_p4  ;;  %s498_s25 = scalar_lea.sflag [#allocation4], %s84_s16 }
   0xf   : > { %s366_s26 = scalar_lea.hbm %s489_s21, 512  ;;  %s371_s29 = scalar_lea.hbm %s553_s0, 2048 }
  0x10   : > { %p367_p10 = scmp.ne.s32.totalorder %s489_s21, %s366_s26  ;;  %p368_p11 = pneg %p493_p8 }
  0x11   : > { %p372_p0 = scmp.lt.s32.totalorder %s489_s21, %s553_s0  ;;  %p373_p1 = scmp.lt.s32.totalorder %s371_s29, %s366_s26 }
  0x12   : > { %p369_p12 = pnand %p368_p11, %p367_p10 }
  0x13   : > { %p374_p2 = por %p373_p1, %p372_p0 }
  0x14   : > { %p370_p13 = pneg %p369_p12 }
  0x16   : > { %p375_p3 = pnand %p374_p2, %p370_p13 }
  0x18   : > { %378 = shalt.err (!%p375_p3)
}
  0x19   : > { %s379_s3 = scalar_lea.vmem %s491_s23, 512  ;;  %s430_s4 = smov [#allocation3]  }
  0x1a   : > { %p380_p4 = scmp.ne.s32.totalorder %s491_s23, %s379_s3  ;;  %s384_s5 = sshll.u32 %s430_s4, 4  ;;  %s385_s5 = int_to_ptr.vmem [resolvable:$false] %s384_s5 }
  0x1b   : > { %s386_s6 = scalar_lea.vmem %s385_s5, 1024  ;;  %p387_p10 = scmp.lt.s32.totalorder %s491_s23, %s385_s5 }
  0x1c   : > { %p382_p5 = pnand %p380_p4, %p368_p11  ;;  %p388_p12 = scmp.lt.s32.totalorder %s386_s6, %s379_s3 }
  0x1e   : > { %p383_p6 = pneg %p382_p5  ;;  %p389_p9 = por %p388_p12, %p387_p10 }
  0x20   : > { %p390_p7 = pnand %p389_p9, %p383_p6 }
  0x22   : > { %393 = shalt.err (!%p390_p7)
}
  0x23   : > { %s431_s12 = smov 128   ;;  %s432_s13 = smov 8  }
  0x24   : > { %328 = dma.hbm_to_vmem [thread:$0]  (!%p493_p8), %s489_s21, 512, %s491_s23, %s498_s25, %s431_s12, %s431_s12, %s432_s13  }
  0x25   : > { %p104_p11 = scmp.lt.s32.totalorder %s428_s9, 5  ;;  %p558_p13 = scmp.ge.s32.totalorder %s428_s9, 1 }
  0x27   : > { %p105_p0 = pnand %p558_p13, %p104_p11 }
  0x28   : > { %s110_s16 = sand.u32 (!%p105_p0), 1, %s420_s7   ;;  %p559_p7 = scmp.ne.s32.totalorder (!%p105_p0), %s556_s15, 0 }
  0x29   : > { %108 = sbr.rel (%p105_p0) target bundleno = 196 (0xc4), region = 24  ;;  %s314_s17 = sshll.u32 (!%p105_p0), %s110_s16, 5 }
  0x2a   : > { %s111_s18 = scalar_lea.sflag (!%p105_p0), [#allocation4], %s110_s16  ;;  %s114_s19 = scalar_lea.vmem (!%p105_p0), [#allocation3], %s314_s17 }
  0x2e   : > { %411 = dma.done.wait (%p559_p7), %s111_s18, 512  }
  0x2f   : > { %413 = vsyncadd (%p559_p7), %s111_s18, 4294966784  ;;  %v144_v0 = vld [vmem:[%s114_s19 + $0x10] sm:$0xff]  ;;  %v142_v1 = vld [vmem:[%s114_s19] sm:$0xff]  ;;  %s433_s20 = smov 127   ;;  %s434_s21 = smov 126   ;;  %vm194_vm0 = vcmask 113664  }
  0x30   : > { %v145_v2 = vld [vmem:[%s114_s19 + $0x18] sm:$0xff]  ;;  %v152_v3 = vmul.f32 0.3473638, %v144_v0  ;;  %v150_v4 = vmul.f32 0.3473638, %v142_v1  ;;  %v143_v5 = vld [vmem:[%s114_s19 + $0x8] sm:$0xff] }
  0x31   : > { %v153_v6 = vmul.f32 0.3473638, %v145_v2  ;;  %v151_v7 = vmul.f32 0.3473638, %v143_v5  ;;  %v146_v8 = vmul.f32 0.3263181, %v142_v1 }
  0x32   : > { %162 = vrot.lane.b32.xlu1 %v152_v3, %s433_s20  ;;  %158 = vrot.lane.b32.xlu0 %v150_v4, %s433_s20  ;;  %v147_v9 = vmul.f32 0.3263181, %v143_v5  ;;  %v148_v10 = vmul.f32 0.3263181, %v144_v0  ;;  %v149_v11 = vmul.f32 0.3263181, %v145_v2 }
  0x33   : > { %s315_s15 = sshll.u32 %s305_s10, 1  ;;  %vm232_vm1 = vcmask 111616  }
  0x34   : > { %p136_p8 = scmp.lt.s32.totalorder %s315_s15, 7 }
  0x36   : > { %164 = vrot.lane.b32.xlu1 %v153_v6, %s433_s20  ;;  %160 = vrot.lane.b32.xlu0 %v151_v7, %s433_s20  ;;  %s565_s15 = smov (!%p136_p8, %s315_s15), 7 }
  0x37   : > { %s322_s9 = sshll.u32 %s565_s15, 4 }
  0x38   : > { %s140_s23 = scalar_lea.vmem %s554_s1, %s322_s9 }
  0x3a   : > { %180 = vrot.lane.b32.xlu1 %v147_v9, %s434_s21  ;;  %178 = vrot.lane.b32.xlu0 %v146_v8, %s434_s21 }
  0x3e   : > { %184 = vrot.lane.b32.xlu1 %v149_v11, %s434_s21  ;;  %182 = vrot.lane.b32.xlu0 %v148_v10, %s434_s21 }
  0xa4   : > { %v163_v12 = vpop.permute.xlu1 %162  ;;  %v159_v13 = vpop.permute.xlu0 %158 }
  0xa5   : > { %v170_v16 = vadd.f32 %v159_v13, %v146_v8  ;;  %v172_v22 = vadd.f32 %v163_v12, %v148_v10 }
  0xa8   : > { %v165_v14 = vpop.permute.xlu1 %164  ;;  %v161_v15 = vpop.permute.xlu0 %160 }
  0xa9   : > { %v171_v17 = vadd.f32 %v161_v15, %v147_v9  ;;  %v173_v23 = vadd.f32 %v165_v14, %v149_v11 }
  0xac   : > { %v181_v18 = vpop.permute.xlu1 %180  ;;  %v179_v19 = vpop.permute.xlu0 %178 }
  0xad   : > { %v191_v20 = vadd.f32 %v181_v18, %v171_v17  ;;  %v190_v21 = vadd.f32 %v179_v19, %v170_v16 }
  0xaf   : > { %196 = vst.msk [vmem:[#allocation2 + $0x8] sm:$0xff] %vm194_vm0, %v191_v20  ;;  %195 = vst.msk [vmem:[#allocation2] sm:$0xff] %vm194_vm0, %v190_v21 }
  0xb0   : > { %v185_v24 = vpop.permute.xlu1 %184  ;;  %v183_v25 = vpop.permute.xlu0 %182 }
  0xb1   : > { %v193_v26 = vadd.f32 %v185_v24, %v173_v23  ;;  %v192_v27 = vadd.f32 %v183_v25, %v172_v22 }
  0xb3   : > { %198 = vst.msk [vmem:[#allocation2 + $0x18] sm:$0xff] %vm194_vm0, %v193_v26  ;;  %197 = vst.msk [vmem:[#allocation2 + $0x10] sm:$0xff] %vm194_vm0, %v192_v27 }
  0xb6   : > { %v200_v28 = vld [vmem:[#allocation2 + $0x8] sm:$0x3f]  ;;  %v199_v34 = vld [vmem:[#allocation2] sm:$0xff] }
  0xb7   : > { %v208_v29 = vld [vmem:[#allocation2 + $0x9] sm:$0x3f]  ;;  %v204_v31 = vmul.f32 0.3263181, %v200_v28  ;;  %v207_v35 = vld [vmem:[#allocation2 + $0x1] sm:$0xff] }
  0xb8   : > { %v220_v30 = vld [vmem:[#allocation2 + $0xa] sm:$0x3f]  ;;  %v212_v32 = vmul.f32 0.3473638, %v208_v29  ;;  %v219_v36 = vld [vmem:[#allocation2 + $0x2] sm:$0xff] }
  0xb9   : > { %v224_v33 = vmul.f32 0.3263181, %v220_v30  ;;  %v203_v38 = vmul.f32 0.3263181, %v199_v34  ;;  %v211_v39 = vmul.f32 0.3473638, %v207_v35 }
  0xba   : > { %v216_v37 = vadd.f32 %v212_v32, %v204_v31  ;;  %v223_v40 = vmul.f32 0.3263181, %v219_v36  ;;  %v202_v41 = vld [vmem:[#allocation2 + $0x18] sm:$0x3f]  ;;  %v201_v48 = vld [vmem:[#allocation2 + $0x10] sm:$0xff] }
  0xbb   : > { %v210_v42 = vld [vmem:[#allocation2 + $0x19] sm:$0x3f]  ;;  %v215_v45 = vadd.f32 %v211_v39, %v203_v38  ;;  %v206_v46 = vmul.f32 0.3263181, %v202_v41  ;;  %v209_v49 = vld [vmem:[#allocation2 + $0x11] sm:$0xff] }
  0xbc   : > { %v222_v43 = vld [vmem:[#allocation2 + $0x1a] sm:$0x3f]  ;;  %v228_v44 = vadd.f32 %v224_v33, %v216_v37  ;;  %v214_v47 = vmul.f32 0.3473638, %v210_v42  ;;  %v205_v50 = vmul.f32 0.3263181, %v201_v48 }
  0xbd   : > { %v213_v51 = vmul.f32 0.3473638, %v209_v49  ;;  %v227_v52 = vadd.f32 %v223_v40, %v215_v45  ;;  %v226_v54 = vmul.f32 0.3263181, %v222_v43  ;;  %v221_v55 = vld [vmem:[#allocation2 + $0x12] sm:$0xff] }
  0xbe   : > { %233 = vst.msk [vmem:[%s140_s23 + $0x8] sm:$0x3f] %vm232_vm1, %v228_v44  ;;  %v218_v53 = vadd.f32 %v214_v47, %v206_v46  ;;  %v225_v57 = vmul.f32 0.3263181, %v221_v55 }
  0xbf   : > { %v217_v56 = vadd.f32 %v213_v51, %v205_v50  ;;  %231 = vst.msk [vmem:[%s140_s23] sm:$0xff] %vm194_vm0, %v227_v52 }
  0xc0   : > { %v230_v58 = vadd.f32 %v226_v54, %v218_v53 }
  0xc1   : > { %v229_v59 = vadd.f32 %v225_v57, %v217_v56 }
  0xc2   : > { %235 = vst.msk [vmem:[%s140_s23 + $0x18] sm:$0x3f] %vm232_vm1, %v230_v58 }
  0xc3   : > { %234 = vst.msk [vmem:[%s140_s23 + $0x10] sm:$0xff] %vm194_vm0, %v229_v59 }
  0xc4 PF: > { %p11_p9 = scmp.ge.s32.totalorder %s465_s11, 6   ;;  %s560_s6 = smov %s420_s7 }
  0xc5   : > { %s561_s7 = smov %s424_s8  ;;  %s562_s8 = smov %s475_s14 }
  0xc6   : > { %s563_s9 = smov %s465_s11  ;;  %13 = sbr.rel (!%p11_p9) target bundleno = 3 (0x3), region = 64 }
  0xcb   :  { %260 = vsyncpa [#allocation4], 1 }
  0xcc   :  { %262 = vsyncpa [#allocation4 + $0x1], 1 }

</bundles_post_ra>
